<compile_context>
chip_gen: v7x
topology: tpu7x:2x2x1
jax: 0.10.0
libtpu: 0.0.40
codegen_flags: <defaults>
</compile_context>

<pallas_src>
import jax
import jax.numpy as jnp
from jax.experimental import pallas as pl
from jax.experimental.pallas import tpu as pltpu


def _deconv_kernel(w_ref, x_ref, b_ref, o_ref):
    # One MXU matmul per grid step (a tile of pixel columns) + bias broadcast.
    o_ref[...] = (
        jnp.dot(w_ref[...], x_ref[...], preferred_element_type=jnp.float32)
        + b_ref[...]
    ).astype(o_ref.dtype)


def _round_down_128(v):
    return max(128, (v // 128) * 128)


def _vmem_budget_bytes():
    """~75% of physical VMEM: ~96 MiB on v5e/v6e (128 MiB), ~48 MiB on v7x (64 MiB)."""
    try:
        cap = int(pltpu.get_tpu_info().vmem_capacity_bytes)
    except Exception:
        cap = 64 * 1024 * 1024  # conservative (v7x-sized) fallback
    return max(32 * 1024 * 1024, cap * 3 // 4)


def _pick_tile_m(M, requested):
    """Largest lane tile (multiple of 128) <= requested; keep the grid >= 2 steps
    when M allows so the 'parallel' axis can be sharded across v7x's two TCs."""
    requested = _round_down_128(requested)
    if M <= requested:
        if M > 256:
            half = (M // 2) // 128 * 128
            if half >= 128:
                return half
        return M  # single full-extent block (always a legal block shape)
    return requested


def up_concat(inputs, down_outputs, weight, bias, *, tile_m=1024,
              compute_dtype=jnp.bfloat16):
    """inputs: (B, Cin, H, W) NCHW; down_outputs: (B, Cd, 2H, 2W) NCHW.
    weight: (Cin, Cout, 2, 2) (ConvTranspose2d layout); bias: (Cout,).
    Returns (B, Cd + Cout, 2H, 2W) float32 NCHW, matching the PyTorch module."""
    B, Cin, H, W = inputs.shape
    Cout = weight.shape[1]
    M = B * H * W          # one matmul column per input pixel
    N = Cout * 4           # (cout, kh, kw) taps of the 2x2 transposed conv

    # Kernel-friendly layouts. bf16 inputs halve HBM read traffic on this
    # memory-bound op; MXU accumulation stays f32, output stays f32.
    x_cm = jnp.transpose(inputs, (1, 0, 2, 3)).reshape(Cin, M).astype(compute_dtype)
    # Row n = co*4 + kh*2 + kw  ->  w_t[n, ci] = weight[ci, co, kh, kw]
    w_t = jnp.transpose(weight, (1, 2, 3, 0)).reshape(N, Cin).astype(compute_dtype)
    bias_col = jnp.repeat(bias.astype(jnp.float32), 4).reshape(N, 1)

    # Tile selection under an explicit VMEM budget (v7x has half the VMEM of
    # v5e/v6e, so re-derive instead of hard-coding).
    in_bytes = jnp.dtype(compute_dtype).itemsize
    budget = _vmem_budget_bytes()
    tm = _pick_tile_m(M, tile_m)
    while tm > 128:
        need = (2 * Cin * tm * in_bytes     # x tile, double-buffered
                + 2 * N * tm * 4            # out tile, double-buffered (f32)
                + 2 * N * Cin * in_bytes    # weight (allow 2 bufs on fallback)
                + 2 * N * 4)                # bias
        if need <= 0.8 * budget:
            break
        tm = _round_down_128(tm // 2)
    grid = (pl.cdiv(M, tm),)
    # TODO(synk): for very large Cout*Cin on v7x (64 MiB VMEM), also tile N with a
    # second "parallel" grid axis so the resident weight slice shrinks.

    cost = pl.CostEstimate(
        flops=2 * M * Cin * N,
        transcendentals=0,
        bytes_accessed=(M * Cin + N * Cin) * in_bytes + (M * N + N) * 4,
    )

    def run(single_buffer_invariants):
        # Weight & bias have grid-invariant index_maps -> one pipeline buffer
        # is enough (saves VMEM; they are only DMA'd once either way).
        inv = ({"pipeline_mode": pl.Buffered(1)} if single_buffer_invariants else {})
        return pl.pallas_call(
            _deconv_kernel,
            out_shape=jax.ShapeDtypeStruct((N, M), jnp.float32),
            grid_spec=pltpu.PrefetchScalarGridSpec(
                num_scalar_prefetch=0,
                grid=grid,
                in_specs=[
                    pl.BlockSpec((N, Cin), lambda i: (0, 0), **inv),
                    pl.BlockSpec((Cin, tm), lambda i: (0, i)),
                    pl.BlockSpec((N, 1), lambda i: (0, 0), **inv),
                ],
                out_specs=pl.BlockSpec((N, tm), lambda i: (0, i)),
            ),
            compiler_params=pltpu.CompilerParams(
                dimension_semantics=("parallel",),
                vmem_limit_bytes=int(budget),
            ),
            cost_estimate=cost,
        )(w_t, x_cm, bias_col)

    try:
        out_cm = run(True)
    except Exception:
        # Fallback for JAX builds without BlockSpec.pipeline_mode support on TPU.
        out_cm = run(False)

    # Scatter the (cout, kh, kw) tap rows onto the upsampled NCHW grid:
    #   y[b, co, 2h+kh, 2w+kw] = out_cm[co*4 + kh*2 + kw, b*H*W + h*W + w]
    y = out_cm.reshape(Cout, 2, 2, B, H, W)
    y = jnp.transpose(y, (3, 0, 4, 1, 5, 2)).reshape(B, Cout, 2 * H, 2 * W)

    # Channel concat (pure memory movement), matching torch.cat([down, up], 1).
    return jnp.concatenate([down_outputs.astype(jnp.float32), y], axis=1)


def up_concat_reference(inputs, down_outputs, weight, bias):
    """Pure-JAX reference for ConvTranspose2d(k=2, s=2) + concat."""
    B, Cin, H, W = inputs.shape
    Cout = weight.shape[1]
    y = jnp.einsum("bchw,cokl->bohwkl", inputs, weight)
    y = jnp.transpose(y, (0, 1, 2, 4, 3, 5)).reshape(B, Cout, 2 * H, 2 * W)
    y = y + bias.reshape(1, Cout, 1, 1)
    return jnp.concatenate([down_outputs, y], axis=1)


if __name__ == "__main__":
    key = jax.random.PRNGKey(0)
    k1, k2, k3, k4 = jax.random.split(key, 4)

    # Small shapes consistent with the module.
    B, in_feat, out_feat, H, W = 2, 8, 4, 8, 8

    inputs = jax.random.normal(k1, (B, in_feat, H, W), dtype=jnp.float32)
    down_outputs = jax.random.normal(
        k2, (B, out_feat, 2 * H, 2 * W), dtype=jnp.float32
    )
    # ConvTranspose2d parameter shapes: weight (Cin, Cout, 2, 2), bias (Cout,).
    weight = 0.1 * jax.random.normal(k3, (in_feat, out_feat, 2, 2), dtype=jnp.float32)
    bias = 0.1 * jax.random.normal(k4, (out_feat,), dtype=jnp.float32)

    out = up_concat(inputs, down_outputs, weight, bias)
    out = jax.block_until_ready(out)

    ref = up_concat_reference(inputs, down_outputs, weight, bias)
    assert out.shape == (B, 2 * out_feat, 2 * H, 2 * W), out.shape
    # bf16 matmul inputs (memory-bound op) => modest tolerance vs f32 reference.
    assert jnp.allclose(out, ref, atol=3e-2, rtol=3e-2), "mismatch vs reference"

    print("KERNEL_OK")
</pallas_src>

<mosaic_0001>
module attributes {stable_mosaic.version = 11 : i64} {
  func.func @_deconv_kernel(%arg0: i32, %arg1: memref<16x8xbf16, #tpu.memory_space<vmem>>, %arg2: memref<8x128xbf16, #tpu.memory_space<vmem>>, %arg3: memref<16x1xf32, #tpu.memory_space<vmem>>, %arg4: memref<16x128xf32, #tpu.memory_space<vmem>>) attributes {dimension_semantics = [#tpu.dimension_semantics<parallel>], iteration_bounds = array<i64: 1>, scalar_prefetch = 0 : i64, scratch_operands = 0 : i64, tpu.core_type = #tpu.core_type<tc>, window_params = [{pipeline_mode = #tpu.pipeline_mode<synchronous>, transform_indices = @transform_0, window_bounds = array<i64: 16, 8>}, {transform_indices = @transform_1, window_bounds = array<i64: 8, 128>}, {pipeline_mode = #tpu.pipeline_mode<synchronous>, transform_indices = @transform_2, window_bounds = array<i64: 16, 1>}, {transform_indices = @transform_3, window_bounds = array<i64: 16, 128>}]} {
    %c0 = arith.constant 0 : index
    %c0_0 = arith.constant 0 : index
    %0 = vector.load %arg1[%c0, %c0_0] : memref<16x8xbf16, #tpu.memory_space<vmem>>, vector<16x8xbf16>
    %c0_1 = arith.constant 0 : index
    %c0_2 = arith.constant 0 : index
    %1 = vector.load %arg2[%c0_1, %c0_2] : memref<8x128xbf16, #tpu.memory_space<vmem>>, vector<8x128xbf16>
    %cst = arith.constant dense<0.000000e+00> : vector<16x128xf32>
    %2 = tpu.matmul %0, %1, %cst {dimension_numbers = #tpu.dot_dimension_numbers<[1], [0], [0], [1], [0, 0, 1, 1], [], []>} : vector<16x8xbf16>, vector<8x128xbf16>, vector<16x128xf32> -> vector<16x128xf32>
    %c0_3 = arith.constant 0 : index
    %c0_4 = arith.constant 0 : index
    %3 = vector.load %arg3[%c0_3, %c0_4] : memref<16x1xf32, #tpu.memory_space<vmem>>, vector<16x1xf32>
    %4 = vector.broadcast %3 : vector<16x1xf32> to vector<16x128xf32>
    %5 = arith.addf %2, %4 : vector<16x128xf32>
    %c0_5 = arith.constant 0 : index
    %c0_6 = arith.constant 0 : index
    %6 = vector.load %arg4[%c0_5, %c0_6] : memref<16x128xf32, #tpu.memory_space<vmem>>, vector<16x128xf32>
    tpu.vector_store %arg4[%c0_5, %c0_6], %5 {strides = array<i32>} : memref<16x128xf32, #tpu.memory_space<vmem>>, vector<16x128xf32>,
    return
  }
  func.func @transform_0(%arg0: i32) -> (i32, i32) {
    %c0_i32 = arith.constant 0 : i32
    %c0_i32_0 = arith.constant 0 : i32
    %c0_i32_1 = arith.constant 0 : i32
    return %c0_i32, %c0_i32_0 : i32, i32
  }
  func.func @transform_1(%arg0: i32) -> (i32, i32) {
    %c0_i32 = arith.constant 0 : i32
    %c0_i32_0 = arith.constant 0 : i32
    return %c0_i32, %arg0 : i32, i32
  }
  func.func @transform_2(%arg0: i32) -> (i32, i32) {
    %c0_i32 = arith.constant 0 : i32
    %c0_i32_0 = arith.constant 0 : i32
    %c0_i32_1 = arith.constant 0 : i32
    return %c0_i32, %c0_i32_0 : i32, i32
  }
  func.func @transform_3(%arg0: i32) -> (i32, i32) {
    %c0_i32 = arith.constant 0 : i32
    %c0_i32_0 = arith.constant 0 : i32
    return %c0_i32, %arg0 : i32, i32
  }
}

module attributes {stable_mosaic.version = 11 : i64} {
  func.func @_deconv_kernel(%arg0: i32, %arg1: memref<16x8xbf16, #tpu.memory_space<vmem>>, %arg2: memref<8x128xbf16, #tpu.memory_space<vmem>>, %arg3: memref<16x1xf32, #tpu.memory_space<vmem>>, %arg4: memref<16x128xf32, #tpu.memory_space<vmem>>) attributes {dimension_semantics = [#tpu.dimension_semantics<parallel>], iteration_bounds = array<i64: 1>, scalar_prefetch = 0 : i64, scratch_operands = 0 : i64, tpu.core_type = #tpu.core_type<tc>, window_params = [{pipeline_mode = #tpu.pipeline_mode<synchronous>, transform_indices = @transform_0, window_bounds = array<i64: 16, 8>}, {transform_indices = @transform_1, window_bounds = array<i64: 8, 128>}, {pipeline_mode = #tpu.pipeline_mode<synchronous>, transform_indices = @transform_2, window_bounds = array<i64: 16, 1>}, {transform_indices = @transform_3, window_bounds = array<i64: 16, 128>}]} {
    %c0 = arith.constant 0 : index
    %c0_0 = arith.constant 0 : index
    %0 = vector.load %arg1[%c0, %c0_0] : memref<16x8xbf16, #tpu.memory_space<vmem>>, vector<16x8xbf16>
    %c0_1 = arith.constant 0 : index
    %c0_2 = arith.constant 0 : index
    %1 = vector.load %arg2[%c0_1, %c0_2] : memref<8x128xbf16, #tpu.memory_space<vmem>>, vector<8x128xbf16>
    %cst = arith.constant dense<0.000000e+00> : vector<16x128xf32>
    %2 = tpu.matmul %0, %1, %cst {dimension_numbers = #tpu.dot_dimension_numbers<[1], [0], [0], [1], [0, 0, 1, 1], [], []>} : vector<16x8xbf16>, vector<8x128xbf16>, vector<16x128xf32> -> vector<16x128xf32>
    %c0_3 = arith.constant 0 : index
    %c0_4 = arith.constant 0 : index
    %3 = vector.load %arg3[%c0_3, %c0_4] : memref<16x1xf32, #tpu.memory_space<vmem>>, vector<16x1xf32>
    %4 = vector.broadcast %3 : vector<16x1xf32> to vector<16x128xf32>
    %5 = arith.addf %2, %4 : vector<16x128xf32>
    %c0_5 = arith.constant 0 : index
    %c0_6 = arith.constant 0 : index
    %6 = vector.load %arg4[%c0_5, %c0_6] : memref<16x128xf32, #tpu.memory_space<vmem>>, vector<16x128xf32>
    tpu.vector_store %arg4[%c0_5, %c0_6], %5 {strides = array<i32>} : memref<16x128xf32, #tpu.memory_space<vmem>>, vector<16x128xf32>,
    return
  }
  func.func @transform_0(%arg0: i32) -> (i32, i32) {
    %c0_i32 = arith.constant 0 : i32
    %c0_i32_0 = arith.constant 0 : i32
    %c0_i32_1 = arith.constant 0 : i32
    return %c0_i32, %c0_i32_0 : i32, i32
  }
  func.func @transform_1(%arg0: i32) -> (i32, i32) {
    %c0_i32 = arith.constant 0 : i32
    %c0_i32_0 = arith.constant 0 : i32
    return %c0_i32, %arg0 : i32, i32
  }
  func.func @transform_2(%arg0: i32) -> (i32, i32) {
    %c0_i32 = arith.constant 0 : i32
    %c0_i32_0 = arith.constant 0 : i32
    %c0_i32_1 = arith.constant 0 : i32
    return %c0_i32, %c0_i32_0 : i32, i32
  }
  func.func @transform_3(%arg0: i32) -> (i32, i32) {
    %c0_i32 = arith.constant 0 : i32
    %c0_i32_0 = arith.constant 0 : i32
    return %c0_i32, %arg0 : i32, i32
  }
}

</mosaic_0001>

<bundles_post_ra>
// kernel: tpu_custom_call.1
= control target key start
LH: loop header
LB: loop body
LE: loop exit
PB: predicated region body
PF: predicated region fallthrough
CT: control target
= control target key end

     0   :  { %vm40_vm0 = vcmask 1043456   ;;  %v145_v1 = vmov 0.0   ;;  %vm146_vm1 = vmmov 0   ;;  %vm36_vm2 = vcmask 64512   ;;  %s195_s0 = inlined_call_operand.vmem [shape: bf16[16,8], index: 0, kind: input, shape index: {}]   ;;  %s196_s1 = inlined_call_operand.vmem [shape: bf16[8,128], index: 1, kind: input, shape index: {}]   ;;  %s197_s2 = inlined_call_operand.vmem [shape: f32[16,1], index: 2, kind: input, shape index: {}]   ;;  %s198_s3 = inlined_call_operand.hbm [shape: f32[16,128], index: 3, kind: output, shape index: {}]  }
   0x1   :  { %v18_v0 = vld [vmem:[%s196_s1] sm:$0xf]  ;;  %107 = vmatprep.subr.bf16.mxu0 %v145_v1  ;;  %109 = vmatprep.mubr.msk.bf16.mxu0 %vm146_vm1, %v145_v1 }
   0x2   :  { %v42_v2 = vsel %vm40_vm0, %v18_v0, 0  ;;  %v120_v3 = vld [vmem:[%s195_s0] sm:$0xff]  }
   0x3   :  { %108 = vmatpush3.bf16.msra.mxu0 %v42_v2  ;;  %v19_v4 = vld [vmem:[%s197_s2] sm:$0xff] }
   0x4   :  { %8 = vsyncpa [#allocation3], 0  ;;  %v147_v5 = vmov 0   ;;  %v20_v6 = vld [vmem:[%s197_s2 + $0x8] sm:$0xff]  ;;  %s148_s19 = smov [#allocation2]  }
   0x5   :  { %119 = vset.pattern.permute.xlu0 %v147_v5  ;;  %s92_s20 = sshll.u32 %s148_s19, 4  ;;  %s93_s20 = int_to_ptr.vmem [resolvable:$true] %s92_s20 }
   0x6   :  { %23 = vperm.xlu0 %119, %v19_v4   ;;  %110 = vmatmul.mubr.msk.bf16.vlgmr.msra.gmra.mrb[0].mxu0 %vm36_vm2, %v120_v3  ;;  %s121_s0 = scalar_lea.vmem %s93_s20, 256  ;;  %p126_p1 = scmp.lt.s32.totalorder %s93_s20, %s93_s20 }
   0x7   :  { %p122_p0 = scmp.ne.s32.totalorder %s93_s20, %s121_s0  ;;  %p127_p2 = scmp.lt.s32.totalorder %s121_s0, %s121_s0 }
   0x9   :  { %p128_p3 = por %p127_p2, %p126_p1 }
   0xa   :  { %28 = vperm.xlu0 %119, %v20_v6  }
   0xb   :  { %p129_p4 = pnand %p128_p3, %p122_p0 }
  0x85   :  { %v24_v7 = vpop.permute.xlu0 %23 }
  0x89   :  { %v29_v11 = vpop.permute.xlu0 %28 }
  0xd9   :  { %v78_v8 = vpop.f32.mrb[0].mxu0 }
  0xda   :  { %v79_v9 = vadd.f32 %v78_v8, %v24_v7  ;;  %v111_v10 = vpop.f32.mrb[1].mxu0 }
  0xdb   :  { %v81_v12 = vpop.f32.mrb[2].mxu0 }
  0xdc   :  { %85 = vst [vmem:[#allocation2] sm:$0xff] %v79_v9  ;;  %v82_v13 = vadd.f32 %v81_v12, %v29_v11  ;;  %v112_v14 = vpop.f32.mrb[3].mxu0 }
  0xde   :  { %86 = vst [vmem:[#allocation2 + $0x8] sm:$0xff] %v82_v13 }
  0xdf   :  { %132 = shalt.err (!%p129_p4)
}
  0xe0   :  { %s133_s22 = scalar_lea.hbm %s198_s3, 256 }
  0xe1   :  { %p134_p5 = scmp.ne.s32.totalorder %s198_s3, %s133_s22  ;;  %p137_p6 = scmp.lt.u32.totalorder %s133_s22, %s198_s3 }
  0xe3   :  { %p139_p7 = pnand %p137_p6, %p134_p5 }
  0xe5   :  { %142 = shalt.err (!%p139_p7)
}
  0xe6   :  { %s149_s27 = smov 128   ;;  %s150_s28 = smov 8  }
  0xe7   :  { %98 = dma.vmem_to_hbm [thread:$0]  %s93_s20, 256, %s198_s3, [#allocation3], %s149_s27, %s149_s27, %s150_s28  }
  0xe8   :  { %143 = dma.done.wait [#allocation3], 256  }
  0xe9   :  { %144 = vsyncadd [#allocation3], 4294967040 }
  0xea   :  { %102 = vsyncpa [#allocation3], 1 }

// kernel: tpu_custom_call.1
= control target key start
LH: loop header
LB: loop body
LE: loop exit
PB: predicated region body
PF: predicated region fallthrough
CT: control target
= control target key end

     0   :  { %vm40_vm0 = vcmask 1043456   ;;  %v145_v1 = vmov 0.0   ;;  %vm146_vm1 = vmmov 0   ;;  %vm36_vm2 = vcmask 64512   ;;  %s195_s0 = inlined_call_operand.vmem [shape: bf16[16,8], index: 0, kind: input, shape index: {}]   ;;  %s196_s1 = inlined_call_operand.vmem [shape: bf16[8,128], index: 1, kind: input, shape index: {}]   ;;  %s197_s2 = inlined_call_operand.vmem [shape: f32[16,1], index: 2, kind: input, shape index: {}]   ;;  %s198_s3 = inlined_call_operand.hbm [shape: f32[16,128], index: 3, kind: output, shape index: {}]  }
   0x1   :  { %v18_v0 = vld [vmem:[%s196_s1] sm:$0xf]  ;;  %107 = vmatprep.subr.bf16.mxu0 %v145_v1  ;;  %109 = vmatprep.mubr.msk.bf16.mxu0 %vm146_vm1, %v145_v1 }
   0x2   :  { %v42_v2 = vsel %vm40_vm0, %v18_v0, 0  ;;  %v120_v3 = vld [vmem:[%s195_s0] sm:$0xff]  }
   0x3   :  { %108 = vmatpush3.bf16.msra.mxu0 %v42_v2  ;;  %v19_v4 = vld [vmem:[%s197_s2] sm:$0xff] }
   0x4   :  { %8 = vsyncpa [#allocation3], 0  ;;  %v147_v5 = vmov 0   ;;  %v20_v6 = vld [vmem:[%s197_s2 + $0x8] sm:$0xff]  ;;  %s148_s19 = smov [#allocation2]  }
   0x5   :  { %119 = vset.pattern.permute.xlu0 %v147_v5  ;;  %s92_s20 = sshll.u32 %s148_s19, 4  ;;  %s93_s20 = int_to_ptr.vmem [resolvable:$true] %s92_s20 }
   0x6   :  { %23 = vperm.xlu0 %119, %v19_v4   ;;  %110 = vmatmul.mubr.msk.bf16.vlgmr.msra.gmra.mrb[0].mxu0 %vm36_vm2, %v120_v3  ;;  %s121_s0 = scalar_lea.vmem %s93_s20, 256  ;;  %p126_p1 = scmp.lt.s32.totalorder %s93_s20, %s93_s20 }
   0x7   :  { %p122_p0 = scmp.ne.s32.totalorder %s93_s20, %s121_s0  ;;  %p127_p2 = scmp.lt.s32.totalorder %s121_s0, %s121_s0 }
   0x9   :  { %p128_p3 = por %p127_p2, %p126_p1 }
   0xa   :  { %28 = vperm.xlu0 %119, %v20_v6  }
   0xb   :  { %p129_p4 = pnand %p128_p3, %p122_p0 }
  0x85   :  { %v24_v7 = vpop.permute.xlu0 %23 }
  0x89   :  { %v29_v11 = vpop.permute.xlu0 %28 }
  0xd9   :  { %v78_v8 = vpop.f32.mrb[0].mxu0 }
  0xda   :  { %v79_v9 = vadd.f32 %v78_v8, %v24_v7  ;;  %v111_v10 = vpop.f32.mrb[1].mxu0 }
  0xdb   :  { %v81_v12 = vpop.f32.mrb[2].mxu0 }
  0xdc   :  { %85 = vst [vmem:[#allocation2] sm:$0xff] %v79_v9  ;;  %v82_v13 = vadd.f32 %v81_v12, %v29_v11  ;;  %v112_v14 = vpop.f32.mrb[3].mxu0 }
  0xde   :  { %86 = vst [vmem:[#allocation2 + $0x8] sm:$0xff] %v82_v13 }
  0xdf   :  { %132 = shalt.err (!%p129_p4)
}
  0xe0   :  { %s133_s22 = scalar_lea.hbm %s198_s3, 256 }
  0xe1   :  { %p134_p5 = scmp.ne.s32.totalorder %s198_s3, %s133_s22  ;;  %p137_p6 = scmp.lt.u32.totalorder %s133_s22, %s198_s3 }
  0xe3   :  { %p139_p7 = pnand %p137_p6, %p134_p5 }
  0xe5   :  { %142 = shalt.err (!%p139_p7)
}
  0xe6   :  { %s149_s27 = smov 128   ;;  %s150_s28 = smov 8  }
  0xe7   :  { %98 = dma.vmem_to_hbm [thread:$0]  %s93_s20, 256, %s198_s3, [#allocation3], %s149_s27, %s149_s27, %s150_s28  }
  0xe8   :  { %143 = dma.done.wait [#allocation3], 256  }
  0xe9   :  { %144 = vsyncadd [#allocation3], 4294967040 }
  0xea   :  { %102 = vsyncpa [#allocation3], 1 }

</bundles_post_ra>
